<compile_context>
chip_gen: v7x
topology: tpu7x:2x2x1
jax: 0.10.0
libtpu: 0.0.40
codegen_flags: <defaults>
</compile_context>

<pallas_src>
import functools

import jax
import jax.numpy as jnp
from jax import lax
from jax.experimental import pallas as pl
from jax.experimental.pallas import tpu as pltpu


# --------------------------------------------------------------------------
# Kernel 1: fused QKV projection (scale folded into q).
# --------------------------------------------------------------------------
def _qkv_proj_kernel(x_ref, w_ref, q_ref, k_ref, v_ref, *, head_size, scale):
    # x_ref: (Tm, E)   w_ref: (E, 3H)   q/k/v_ref: (Tm, H)
    qkv = jnp.dot(x_ref[...], w_ref[...], preferred_element_type=jnp.float32)
    h = head_size
    q_ref[...] = (qkv[:, :h] * jnp.float32(scale)).astype(q_ref.dtype)
    k_ref[...] = qkv[:, h:2 * h].astype(k_ref.dtype)
    v_ref[...] = qkv[:, 2 * h:].astype(v_ref.dtype)


# --------------------------------------------------------------------------
# Kernel 2: flash-style causal attention with online softmax.
# --------------------------------------------------------------------------
def _flash_attn_kernel(q_ref, k_ref, v_ref, o_ref, m_sc, l_sc, acc_sc):
    # q_ref: (Tq, H)  k_ref/v_ref: (Tk, H)  o_ref: (Tq, H)
    # m_sc/l_sc: (Tq, 1) f32   acc_sc: (Tq, H) f32
    qi = pl.program_id(1)
    ki = pl.program_id(2)

    @pl.when(ki == 0)
    def _init():
        m_sc[...] = jnp.full_like(m_sc, -jnp.inf)
        l_sc[...] = jnp.zeros_like(l_sc)
        acc_sc[...] = jnp.zeros_like(acc_sc)

    def _scores():
        # q @ k^T contracting the head dim; inputs stay in storage dtype,
        # accumulation in f32 on the MXU.  Scale was pre-folded into q.
        return lax.dot_general(q_ref[...], k_ref[...],
                               (((1,), (1,)), ((), ())),
                               preferred_element_type=jnp.float32)

    def _online_update(s):
        m_prev = m_sc[...]
        m_new = jnp.maximum(m_prev, jnp.max(s, axis=-1, keepdims=True))
        alpha = jnp.exp(m_prev - m_new)
        p = jnp.exp(s - m_new)
        l_sc[...] = alpha * l_sc[...] + jnp.sum(p, axis=-1, keepdims=True)
        acc_sc[...] = alpha * acc_sc[...] + jnp.dot(
            p.astype(v_ref.dtype), v_ref[...], preferred_element_type=jnp.float32)
        m_sc[...] = m_new

    # Key blocks strictly below the diagonal need no masking at all.
    @pl.when(ki < qi)
    def _off_diag():
        _online_update(_scores())

    # Diagonal block: mask the upper triangle, update, then finalize.  Blocks
    # with ki > qi are fully masked and skipped entirely (no FLOPs, no exp).
    @pl.when(ki == qi)
    def _diag():
        s = _scores()
        tq, tk = s.shape
        row = lax.broadcasted_iota(jnp.int32, (tq, 1), 0)
        col = lax.broadcasted_iota(jnp.int32, (1, tk), 1)
        s = jnp.where(col <= row, s, -1e30)
        _online_update(s)
        # TODO(synk): training-mode dropout on attention weights not implemented
        # (eval/inference => identity); would use pltpu.prng_seed + stateful_bernoulli.
        inv_l = pl.reciprocal(l_sc[...], approx=True)
        o_ref[...] = (acc_sc[...] * inv_l).astype(o_ref.dtype)


# --------------------------------------------------------------------------
# Wrapper
# --------------------------------------------------------------------------
def _pick_tile(t: int, preferred: int = 512) -> int:
    """Largest tile <= `preferred` that divides t (multiple of 8), else t."""
    if t <= preferred:
        return t
    for cand in range(preferred, 7, -8):
        if t % cand == 0:
            return cand
    return t


def _vmem_limit_bytes(default: int = 48 * 1024 * 1024) -> int:
    """Per-generation VMEM budget (v7x has 64 MiB physical vs 128 MiB on v5e/v6e)."""
    try:
        cap = getattr(pltpu.get_tpu_info(), "vmem_capacity_bytes", None)
        if cap:
            return int(min(cap * 3 // 4, 112 * 1024 * 1024))
    except Exception:
        pass
    return default


def head_attention(x: jax.Array, w_query: jax.Array, w_key: jax.Array,
                   w_value: jax.Array, dropout_frac: float = 0.0) -> jax.Array:
    """Causal single-head attention. x: (B, T, E); w_*: PyTorch Linear layout (H, E)."""
    B, T, E = x.shape
    H, E2 = w_query.shape
    assert E == E2, "embedding dim mismatch"
    scale = 1.0 / float(H) ** 0.5

    # One fused, lane-dense (E, 3H) weight: single transpose+concat, one DMA,
    # one MXU pass for all three projections.
    w_qkv = jnp.concatenate([w_query, w_key, w_value], axis=0).T.astype(x.dtype)

    tile = _pick_tile(T)
    n_t = T // tile
    vmem_limit = _vmem_limit_bytes()

    # ---- Kernel 1: fused QKV projection -----------------------------------
    q, k, v = pl.pallas_call(
        functools.partial(_qkv_proj_kernel, head_size=H, scale=scale),
        out_shape=(jax.ShapeDtypeStruct((B, T, H), x.dtype),
                   jax.ShapeDtypeStruct((B, T, H), x.dtype),
                   jax.ShapeDtypeStruct((B, T, H), x.dtype)),
        grid_spec=pltpu.PrefetchScalarGridSpec(
            num_scalar_prefetch=0,
            grid=(B, n_t),
            in_specs=[
                pl.BlockSpec((None, tile, E), lambda b, m: (b, m, 0)),
                pl.BlockSpec((E, 3 * H), lambda b, m: (0, 0)),
            ],
            out_specs=[
                pl.BlockSpec((None, tile, H), lambda b, m: (b, m, 0)),
                pl.BlockSpec((None, tile, H), lambda b, m: (b, m, 0)),
                pl.BlockSpec((None, tile, H), lambda b, m: (b, m, 0)),
            ],
        ),
        compiler_params=pltpu.CompilerParams(
            dimension_semantics=("parallel", "parallel"),
            vmem_limit_bytes=vmem_limit,
        ),
    )(x, w_qkv)

    # ---- Kernel 2: flash-style causal attention ----------------------------
    out = pl.pallas_call(
        _flash_attn_kernel,
        out_shape=jax.ShapeDtypeStruct((B, T, H), x.dtype),
        grid_spec=pltpu.PrefetchScalarGridSpec(
            num_scalar_prefetch=0,
            grid=(B, n_t, n_t),          # reduction (key) axis last
            in_specs=[
                pl.BlockSpec((None, tile, H), lambda b, qi, ki: (b, qi, 0)),
                pl.BlockSpec((None, tile, H), lambda b, qi, ki: (b, ki, 0)),
                pl.BlockSpec((None, tile, H), lambda b, qi, ki: (b, ki, 0)),
            ],
            out_specs=pl.BlockSpec((None, tile, H), lambda b, qi, ki: (b, qi, 0)),
            scratch_shapes=[
                pltpu.VMEM((tile, 1), jnp.float32),   # running max m
                pltpu.VMEM((tile, 1), jnp.float32),   # running sum l
                pltpu.VMEM((tile, H), jnp.float32),   # output accumulator
            ],
        ),
        compiler_params=pltpu.CompilerParams(
            # batch and query-block axes parallel (v7x megacore), key axis arbitrary
            dimension_semantics=("parallel", "parallel", "arbitrary"),
            vmem_limit_bytes=vmem_limit,
        ),
    )(q, k, v)
    return out


# --------------------------------------------------------------------------
# Pure-JAX reference mirroring the PyTorch module (eval mode).
# --------------------------------------------------------------------------
def _reference_head(x, w_query, w_key, w_value):
    q = x @ w_query.T
    k = x @ w_key.T
    v = x @ w_value.T
    T = x.shape[1]
    w = jnp.einsum('bth,bsh->bts', q, k) * (1.0 / k.shape[-1] ** 0.5)
    mask = jnp.tril(jnp.ones((T, T)))
    w = jnp.where(mask == 0, -jnp.inf, w)
    w = jax.nn.softmax(w, axis=-1)
    return jnp.einsum('bts,bsh->bth', w, v)


if __name__ == "__main__":
    key = jax.random.PRNGKey(0)
    k_x, k_q, k_k, k_v = jax.random.split(key, 4)

    # Small shapes consistent with the module: B x T x E input, head_size output.
    batch, block_size, n_embed, head_size = 2, 8, 32, 16
    dropout_frac = 0.0  # eval / inference

    x = jax.random.normal(k_x, (batch, block_size, n_embed), dtype=jnp.float32)
    # PyTorch nn.Linear weight layout: (out_features, in_features) = (head_size, n_embed)
    bound = 1.0 / (n_embed ** 0.5)
    w_query = jax.random.uniform(k_q, (head_size, n_embed), jnp.float32, -bound, bound)
    w_key = jax.random.uniform(k_k, (head_size, n_embed), jnp.float32, -bound, bound)
    w_value = jax.random.uniform(k_v, (head_size, n_embed), jnp.float32, -bound, bound)

    y = head_attention(x, w_query, w_key, w_value, dropout_frac)
    y = jax.block_until_ready(y)

    ref = _reference_head(x, w_query, w_key, w_value)

    assert y.shape == (batch, block_size, head_size) and y.dtype == x.dtype
    assert jnp.allclose(y, ref, atol=2e-3, rtol=2e-3), "mismatch vs reference"
    print("KERNEL_OK")
</pallas_src>

<mosaic_0001>
module attributes {stable_mosaic.version = 11 : i64} {
  func.func @_qkv_proj_kernel(%arg0: i32, %arg1: i32, %arg2: memref<1x8x32xf32, #tpu.memory_space<vmem>>, %arg3: memref<32x48xf32, #tpu.memory_space<vmem>>, %arg4: memref<1x8x16xf32, #tpu.memory_space<vmem>>, %arg5: memref<1x8x16xf32, #tpu.memory_space<vmem>>, %arg6: memref<1x8x16xf32, #tpu.memory_space<vmem>>) attributes {dimension_semantics = [#tpu.dimension_semantics<parallel>, #tpu.dimension_semantics<parallel>], iteration_bounds = array<i64: 2, 1>, scalar_prefetch = 0 : i64, scratch_operands = 0 : i64, tpu.core_type = #tpu.core_type<tc>, window_params = [{transform_indices = @transform_0, window_bounds = array<i64: 1, 8, 32>}, {pipeline_mode = #tpu.pipeline_mode<synchronous>, transform_indices = @transform_1, window_bounds = array<i64: 32, 48>}, {transform_indices = @transform_2, window_bounds = array<i64: 1, 8, 16>}, {transform_indices = @transform_3, window_bounds = array<i64: 1, 8, 16>}, {transform_indices = @transform_4, window_bounds = array<i64: 1, 8, 16>}]} {
    %c0 = arith.constant 0 : index
    %c0_0 = arith.constant 0 : index
    %c0_1 = arith.constant 0 : index
    %0 = vector.load %arg2[%c0, %c0_0, %c0_1] : memref<1x8x32xf32, #tpu.memory_space<vmem>>, vector<1x8x32xf32>
    %1 = vector.shape_cast %0 : vector<1x8x32xf32> to vector<8x32xf32>
    %c0_2 = arith.constant 0 : index
    %c0_3 = arith.constant 0 : index
    %2 = vector.load %arg3[%c0_2, %c0_3] : memref<32x48xf32, #tpu.memory_space<vmem>>, vector<32x48xf32>
    %cst = arith.constant dense<0.000000e+00> : vector<8x48xf32>
    %3 = tpu.matmul %1, %2, %cst {dimension_numbers = #tpu.dot_dimension_numbers<[1], [0], [0], [1], [0, 0, 1, 1], [], []>} : vector<8x32xf32>, vector<32x48xf32>, vector<8x48xf32> -> vector<8x48xf32>
    %4 = vector.extract_strided_slice %3 {offsets = [0, 0], sizes = [8, 16], strides = [1, 1]} : vector<8x48xf32> to vector<8x16xf32>
    %cst_4 = arith.constant 2.500000e-01 : f32
    %5 = vector.broadcast %cst_4 : f32 to vector<8x16xf32>
    %6 = arith.mulf %4, %5 : vector<8x16xf32>
    %c0_5 = arith.constant 0 : index
    %c0_6 = arith.constant 0 : index
    %c0_7 = arith.constant 0 : index
    %7 = vector.load %arg4[%c0_5, %c0_6, %c0_7] : memref<1x8x16xf32, #tpu.memory_space<vmem>>, vector<1x8x16xf32>
    %8 = vector.shape_cast %7 : vector<1x8x16xf32> to vector<8x16xf32>
    %9 = vector.shape_cast %6 : vector<8x16xf32> to vector<1x8x16xf32>
    tpu.vector_store %arg4[%c0_5, %c0_6, %c0_7], %9 {strides = array<i32>} : memref<1x8x16xf32, #tpu.memory_space<vmem>>, vector<1x8x16xf32>,
    %10 = vector.extract_strided_slice %3 {offsets = [0, 16], sizes = [8, 16], strides = [1, 1]} : vector<8x48xf32> to vector<8x16xf32>
    %c0_8 = arith.constant 0 : index
    %c0_9 = arith.constant 0 : index
    %c0_10 = arith.constant 0 : index
    %11 = vector.load %arg5[%c0_8, %c0_9, %c0_10] : memref<1x8x16xf32, #tpu.memory_space<vmem>>, vector<1x8x16xf32>
    %12 = vector.shape_cast %11 : vector<1x8x16xf32> to vector<8x16xf32>
    %13 = vector.shape_cast %10 : vector<8x16xf32> to vector<1x8x16xf32>
    tpu.vector_store %arg5[%c0_8, %c0_9, %c0_10], %13 {strides = array<i32>} : memref<1x8x16xf32, #tpu.memory_space<vmem>>, vector<1x8x16xf32>,
    %14 = vector.extract_strided_slice %3 {offsets = [0, 32], sizes = [8, 16], strides = [1, 1]} : vector<8x48xf32> to vector<8x16xf32>
    %c0_11 = arith.constant 0 : index
    %c0_12 = arith.constant 0 : index
    %c0_13 = arith.constant 0 : index
    %15 = vector.load %arg6[%c0_11, %c0_12, %c0_13] : memref<1x8x16xf32, #tpu.memory_space<vmem>>, vector<1x8x16xf32>
    %16 = vector.shape_cast %15 : vector<1x8x16xf32> to vector<8x16xf32>
    %17 = vector.shape_cast %14 : vector<8x16xf32> to vector<1x8x16xf32>
    tpu.vector_store %arg6[%c0_11, %c0_12, %c0_13], %17 {strides = array<i32>} : memref<1x8x16xf32, #tpu.memory_space<vmem>>, vector<1x8x16xf32>,
    return
  }
  func.func @transform_0(%arg0: i32, %arg1: i32) -> (i32, i32, i32) {
    %c0_i32 = arith.constant 0 : i32
    %c0_i32_0 = arith.constant 0 : i32
    return %arg0, %arg1, %c0_i32 : i32, i32, i32
  }
  func.func @transform_1(%arg0: i32, %arg1: i32) -> (i32, i32) {
    %c0_i32 = arith.constant 0 : i32
    %c0_i32_0 = arith.constant 0 : i32
    %c0_i32_1 = arith.constant 0 : i32
    return %c0_i32, %c0_i32_0 : i32, i32
  }
  func.func @transform_2(%arg0: i32, %arg1: i32) -> (i32, i32, i32) {
    %c0_i32 = arith.constant 0 : i32
    %c0_i32_0 = arith.constant 0 : i32
    return %arg0, %arg1, %c0_i32 : i32, i32, i32
  }
  func.func @transform_3(%arg0: i32, %arg1: i32) -> (i32, i32, i32) {
    %c0_i32 = arith.constant 0 : i32
    %c0_i32_0 = arith.constant 0 : i32
    return %arg0, %arg1, %c0_i32 : i32, i32, i32
  }
  func.func @transform_4(%arg0: i32, %arg1: i32) -> (i32, i32, i32) {
    %c0_i32 = arith.constant 0 : i32
    %c0_i32_0 = arith.constant 0 : i32
    return %arg0, %arg1, %c0_i32 : i32, i32, i32
  }
}

</mosaic_0001>

<bundles_post_ra>
// kernel: tpu_custom_call.1
= control target key start
LH: loop header
LB: loop body
LE: loop exit
PB: predicated region body
PF: predicated region fallthrough
CT: control target
= control target key end

     0   :  { %10 = vsyncpa [#allocation3], 0  ;;  %s1237_s0 = inlined_call_operand.hbm [shape: f32[2,8,32], index: 0, kind: input, shape index: {}]   ;;  %s1238_s1 = inlined_call_operand.hbm [shape: f32[32,48], index: 1, kind: input, shape index: {}]   ;;  %s1239_s2 = inlined_call_operand.hbm [shape: f32[2,8,16], index: 2, kind: output, shape index: {0}]   ;;  %s1240_s3 = inlined_call_operand.hbm [shape: f32[2,8,16], index: 3, kind: output, shape index: {1}]   ;;  %s1241_s4 = inlined_call_operand.hbm [shape: f32[2,8,16], index: 4, kind: output, shape index: {2}]  }
   0x1   :  { %12 = vsyncpa [#allocation3 + $0x1], 0 }
   0x2   :  { %13 = vsyncpa [#allocation6], 0 }
   0x3   :  { %14 = vsyncpa [#allocation4], 0 }
   0x4   :  { %16 = vsyncpa [#allocation4 + $0x1], 0 }
   0x5   :  { %17 = vsyncpa [#allocation9], 0 }
   0x6   :  { %19 = vsyncpa [#allocation9 + $0x1], 0  ;;  %s941_s15 = smov 0   ;;  %s943_s16 = smov 0  }
   0x7   :  { %s945_s17 = smov 0   ;;  %s947_s18 = smov 0  }
   0x8   :  { %s949_s19 = smov 0   ;;  %s951_s20 = smov 0  }
   0x9 LB: > { %s972_s21 = sadd.s32 4294967295, %s902_s20   ;;  %s565_s22 = sadd.s32 4294967294, %s902_s20   ;;  %s902_s20 = sphi %s951_s20, %s25_s20   ;;  %s898_s19 = sphi %s949_s19, %s1263_s19   ;;  %s894_s18 = sphi %s947_s18, %s1262_s18   ;;  %s890_s17 = sphi %s945_s17, %s1261_s17   ;;  %s886_s16 = sphi %s943_s16, %s1260_s16   ;;  %s882_s15 = sphi %s941_s15, %s1259_s15  }
   0xa   : > { %p59_p0 = scmp.ne.s32.totalorder %s886_s16, %s882_s15  ;;  %p1242_p1 = scmp.eq.s32.totalorder %s972_s21, 0 }
   0xb   : > { %p112_p3 = scmp.eq.s32.totalorder %s565_s22, 1  ;;  %p566_p5 = scmp.ge.s32.totalorder %s902_s20, 1 }
   0xc   : > { %p983_p4 = por %p1242_p1, %p59_p0  ;;  %p175_p7 = scmp.lt.s32.totalorder %s902_s20, 3 }
   0xd   : > { %p988_p6 = por %p112_p3, %p59_p0  ;;  %s904_s26 = smov [#allocation5]  }
   0xe   : > { %s1245_s23 = scalar_select %p983_p4, 1, 0 }
   0xf   : > { %s1246_s24 = scalar_select %p988_p6, 1, 0 }
  0x10   : > { %p993_p8 = pnand %p566_p5, %p175_p7  ;;  %s187_s27 = sshll.u32 %s904_s26, 4  ;;  %s188_s27 = int_to_ptr.vmem [resolvable:$true] %s187_s27 }
  0x11   : > { %s37_s29 = sadd.s32 1, %s898_s19  ;;  %s698_s6 = scalar_lea.hbm %s1238_s1, 512 }
  0x12   : > { %s1247_s25 = scalar_select %p993_p8, 1, 0 }
  0x13   : > { %p620_p9 = pneg %p993_p8  ;;  %p699_p12 = scmp.ne.s32.totalorder %s1238_s1, %s698_s6 }
  0x14   : > { %p705_p5 = scmp.lt.u32.totalorder %s698_s6, %s1238_s1 }
  0x15   : > { %p1002_p11 = pnand %p620_p9, %p1242_p1 }
  0x17   : > { %p700_p13 = pneg %p1002_p11 }
  0x19   : > { %p701_p0 = pnand %p700_p13, %p699_p12 }
  0x1b   : > { %p702_p3 = pneg %p701_p0 }
  0x1d   : > { %p707_p7 = pnand %p705_p5, %p702_p3 }
  0x1f   : > { %710 = shalt.err (!%p707_p7)
}
  0x20   : > { %s711_s11 = scalar_lea.vmem %s188_s27, 512  ;;  %p719_p2 = scmp.lt.s32.totalorder %s188_s27, %s188_s27 }
  0x21   : > { %p712_p9 = scmp.ne.s32.totalorder %s188_s27, %s711_s11  ;;  %p720_p6 = scmp.lt.s32.totalorder %s711_s11, %s711_s11 }
  0x23   : > { %p714_p10 = pnand %p712_p9, %p700_p13  ;;  %p721_p4 = por %p720_p6, %p719_p2 }
  0x25   : > { %p715_p1 = pneg %p714_p10 }
  0x27   : > { %p722_p8 = pnand %p721_p4, %p715_p1 }
  0x29   : > { %725 = shalt.err (!%p722_p8)
}
  0x2a   : > { %s905_s12 = smov 128   ;;  %s906_s13 = smov 8  }
  0x2b   : > { %623 = dma.hbm_to_vmem [thread:$0]  (!%p1002_p11), %s1238_s1, 512, %s188_s27, [#allocation6], %s905_s12, %s905_s12, %s906_s13  }
  0x2c   : > { %p39_p1 = scmp.ge.s32.totalorder %s37_s29, 2  ;;  %s46_s30 = sadd.s32 1, %s890_s17 }
  0x2d   : > { %p53_p2 = scmp.ne.s32.totalorder %s890_s17, %s886_s16  ;;  %p54_p4 = scmp.eq.s32.totalorder %s902_s20, 0 }
  0x2e   : > { %s1265_s29 = smov (%p39_p1, %s37_s29), 0  ;;  %p1250_p8 = scmp.eq.s32.totalorder %s972_s21, 1 }
  0x2f   : > { %p1029_p6 = por %p54_p4, %p53_p2  ;;  %s41_s28 = ssub.s32 %s898_s19, %s1265_s29 }
  0x30   : > { %p1035_p10 = por %p1250_p8, %p53_p2  ;;  %p639_p12 = scmp.lt.s32.totalorder %s902_s20, 2 }
  0x31   : > { %p44_p11 = scmp.eq.s32.totalorder %s41_s28, 0  ;;  %s201_s27 = sand.u32 1, %s890_s17  }
  0x32   : > { %s569_s7 = sshll.u32 %s201_s27, 3  ;;  %s570_s9 = sshll.u32 %s898_s19, 7 }
  0x33   : > { %s1044_s8 = scalar_select %p44_p11, %s890_s17, %s46_s30  }
  0x34   : > { %s1050_s12 = scalar_lea.hbm %s1237_s0, %s570_s9  ;;  %s205_s13 = scalar_lea.vmem [#allocation2], %s569_s7 }
  0x35   : > { %s213_s14 = sshll.u32 %s205_s13, 4  ;;  %p1056_p13 = pnand %p639_p12, %p1029_p6  ;;  %s1052_s14 = int_to_ptr.vmem [resolvable:$true] %s213_s14 }
  0x36   : > { %s202_s30 = scalar_lea.sflag [#allocation3], %s201_s27  ;;  %s726_s28 = scalar_lea.hbm %s1050_s12, 128 }
  0x37   : > { %p727_p0 = scmp.ne.s32.totalorder %s1050_s12, %s726_s28  ;;  %p728_p3 = pneg %p1056_p13 }
  0x38   : > { %s731_s10 = scalar_lea.hbm %s1237_s0, 256  ;;  %p732_p9 = scmp.lt.u32.totalorder %s1050_s12, %s1237_s0 }
  0x39   : > { %p729_p5 = pnand %p728_p3, %p727_p0  ;;  %p733_p1 = scmp.lt.u32.totalorder %s731_s10, %s726_s28 }
  0x3a   : > { %p735_p4 = scmp.lt.u32.totalorder %s726_s28, %s1050_s12 }
  0x3b   : > { %p730_p7 = pneg %p729_p5  ;;  %p734_p2 = por %p733_p1, %p732_p9 }
  0x3d   : > { %p736_p6 = por %p735_p4, %p734_p2 }
  0x3f   : > { %p737_p8 = pnand %p736_p6, %p730_p7 }
  0x41   : > { %740 = shalt.err (!%p737_p8)
}
  0x42   : > { %s741_s27 = scalar_lea.vmem %s1052_s14, 128  ;;  %s907_s13 = smov [#allocation2]  }
  0x43   : > { %p742_p12 = scmp.ne.s32.totalorder %s1052_s14, %s741_s27  ;;  %s746_s7 = sshll.u32 %s907_s13, 4  ;;  %s747_s7 = int_to_ptr.vmem [resolvable:$false] %s746_s7 }
  0x44   : > { %s748_s9 = scalar_lea.vmem %s747_s7, 256  ;;  %p749_p5 = scmp.lt.s32.totalorder %s1052_s14, %s747_s7 }
  0x45   : > { %p744_p11 = pnand %p742_p12, %p728_p3  ;;  %p750_p9 = scmp.lt.s32.totalorder %s748_s9, %s741_s27 }
  0x47   : > { %p745_p0 = pneg %p744_p11  ;;  %p751_p1 = por %p750_p9, %p749_p5 }
  0x49   : > { %p752_p2 = pnand %p751_p1, %p745_p0 }
  0x4b   : > { %755 = shalt.err (!%p752_p2)
}
  0x4c   : > { %627 = dma.hbm_to_vmem [thread:$0]  (!%p1056_p13), %s1050_s12, 128, %s1052_s14, %s202_s30  }
  0x4d   : > { %p1253_p7 = scmp.ne.s32.totalorder %s1247_s25, 0 }
  0x4e   : > { %s1088_s28 = sand.u32 (!%p1253_p7), 1, %s886_s16   ;;  %p1254_p3 = scmp.ne.s32.totalorder (!%p1253_p7), %s1245_s23, 0 }
  0x4f   : > { %222 = sbr.rel (%p1253_p7) target bundleno = 464 (0x1d0), region = 28  ;;  %s1091_s10 = sshll.u32 (!%p1253_p7), %s1088_s28, 3 }
  0x50   : > { %s225_s5 = scalar_lea.sflag (!%p1253_p7), [#allocation3], %s1088_s28  ;;  %s228_s11 = scalar_lea.vmem (!%p1253_p7), [#allocation2], %s1091_s10 }
  0x56   : > { %865 = dma.done.wait (%p1254_p3), %s225_s5, 128  }
  0x57   : > { %867 = vsyncadd (%p1254_p3), %s225_s5, 4294967168  ;;  %p1255_p13 = scmp.eq.s32.totalorder %s972_s21, 0 }
  0x59   : > { %869 = dma.done.wait (%p1255_p13), [#allocation6], 512   ;;  %p1256_p4 = pmov %p1255_p13 }
  0x5a   : > { %v908_v0 = vmov 0.0|0.0   ;;  %vm909_vm0 = vmmov 0   ;;  %v910_v1 = vmov 0.0   ;;  %v268_v2 = vld [vmem:[#allocation5] sm:$0xff]  ;;  %v269_v3 = vld [vmem:[#allocation5 + $0x8] sm:$0xff]  ;;  %v270_v4 = vld [vmem:[#allocation5 + $0x10] sm:$0xff] }
  0x5b   : > { %871 = vsyncadd (%p1256_p4), [#allocation6], 4294966784  ;;  %602 = vmatprep.subr.bf16.mxu0 %v908_v0  ;;  %599 = vmatprep.mubr.msk.f32.mxu0 %vm909_vm0, %v910_v1  ;;  %v603_v5 = vpack.c.bf16 %v269_v3, %v268_v2  ;;  %v271_v6 = vld [vmem:[#allocation5 + $0x18] sm:$0xff]  ;;  %vm272_vm1 = vcmask 261120   ;;  %s1104_s23 = sshll.u32 %s894_s18, 7  ;;  %s252_s25 = scalar_lea.vmem [#allocation7], %s1091_s10 }
  0x5c   : > { %v606_v7 = vpack.c.bf16 %v271_v6, %v270_v4  ;;  %v267_v8 = vld [vmem:[%s228_s11] sm:$0xff]  ;;  %s383_s12 = sshll.u32 %s252_s25, 4  ;;  %vm347_vm2 = vcmask 130048   ;;  %s911_s14 = smov 112   ;;  %s1113_s12 = int_to_ptr.vmem [resolvable:$true] %s383_s12 }
  0x5d   : > { %604 = vmatpush3.bf16.msra.mxu0 %v603_v5  ;;  %s1111_s27 = scalar_lea.hbm %s1239_s2, %s1104_s23  ;;  %s359_s18 = scalar_lea.sflag [#allocation4], %s1088_s28 }
  0x5e   : > { %605 = vmatprep.subr.bf16.mxu0 %v908_v0  ;;  %s756_s13 = scalar_lea.vmem %s1113_s12, 128  ;;  %s912_s7 = smov [#allocation7]  }
  0x5f   : > { %p757_p6 = scmp.ne.s32.totalorder %s1113_s12, %s756_s13  ;;  %s760_s9 = sshll.u32 %s912_s7, 4  ;;  %s761_s9 = int_to_ptr.vmem [resolvable:$false] %s760_s9 }
  0x60   : > { %s762_s5 = scalar_lea.vmem %s761_s9, 256  ;;  %p763_p11 = scmp.lt.s32.totalorder %s1113_s12, %s761_s9 }
  0x61   : > { %607 = vmatpush3.bf16.msra.mxu0 %v606_v7  ;;  %p758_p8 = pnand %p757_p6, %p1035_p10  ;;  %p764_p0 = scmp.lt.s32.totalorder %s762_s5, %s756_s13 }
  0x63   : > { %p759_p12 = pneg %p758_p8  ;;  %p765_p5 = por %p764_p0, %p763_p11 }
  0x64   : > { %600 = vmatmul.mubr.msk.f32.vlgmr.msra.gmra.mrb[0].mxu0 %vm272_vm1, %v267_v8 }
  0x65   : > { %p766_p9 = pnand %p765_p5, %p759_p12 }
 0x137   : > { %v342_v9 = vpop.f32.mrb[0].mxu0 }
 0x138   : > { %v346_v10 = vmul.f32 0.25, %v342_v9  ;;  %350 = vrot.lane.b32.xlu0 %v342_v9, %s911_s14  ;;  %v601_v11 = vpop.f32.mrb[1].mxu0 }
 0x13a   : > { %348 = vst.msk [vmem:[%s252_s25] sm:$0xff] %vm347_vm2, %v346_v10 }
 0x13b   : > { %769 = shalt.err (!%p766_p9)
}
 0x13c   : > { %s770_s28 = scalar_lea.hbm %s1111_s27, 128  ;;  %s774_s14 = scalar_lea.hbm %s1239_s2, 256 }
 0x13d   : > { %p771_p1 = scmp.ne.s32.totalorder %s1111_s27, %s770_s28  ;;  %p775_p3 = scmp.lt.u32.totalorder %s1111_s27, %s1239_s2 }
 0x13e   : > { %p776_p13 = scmp.lt.u32.totalorder %s774_s14, %s770_s28  ;;  %p778_p6 = scmp.lt.u32.totalorder %s770_s28, %s1111_s27 }
 0x13f   : > { %p772_p2 = pnand %p771_p1, %p1035_p10 }
 0x140   : > { %p777_p4 = por %p776_p13, %p775_p3 }
 0x141   : > { %p773_p7 = pneg %p772_p2 }
 0x142   : > { %p779_p8 = por %p778_p6, %p777_p4 }
 0x144   : > { %p780_p12 = pnand %p779_p8, %p773_p7 }
 0x146   : > { %783 = shalt.err (!%p780_p12)
}
 0x147   : > { %614 = dma.vmem_to_hbm [thread:$0]  (%p1035_p10), %s1113_s12, 128, %s1111_s27, %s359_s18  }
 0x148   : > { %s913_s13 = smov 96   ;;  %s363_s7 = sand.u32 1, %s972_s21  }
 0x149   : > { %354 = vrot.lane.b32.xlu0 %v342_v9, %s913_s13  ;;  %s259_s9 = scalar_lea.vmem [#allocation8], %s1091_s10  ;;  %s1144_s25 = scalar_lea.hbm %s1240_s3, %s1104_s23 }
 0x14a   : > { %s397_s5 = sshll.u32 %s259_s9, 4  ;;  %s266_s14 = scalar_lea.vmem [#allocation10], %s1091_s10  ;;  %s1146_s5 = int_to_ptr.vmem [resolvable:$true] %s397_s5 }
 0x14b   : > { %s1151_s26 = sshll.u32 %s266_s14, 4  ;;  %s1154_s21 = scalar_lea.sflag [#allocation9], %s363_s7  ;;  %s1185_s26 = int_to_ptr.vmem [resolvable:$true] %s1151_s26 }
 0x14c   : > { %s784_s12 = scalar_lea.vmem %s1146_s5, 128  ;;  %s914_s27 = smov [#allocation8]  }
 0x14d   : > { %p785_p11 = scmp.ne.s32.totalorder %s1146_s5, %s784_s12  ;;  %s788_s18 = sshll.u32 %s914_s27, 4  ;;  %s789_s18 = int_to_ptr.vmem [resolvable:$false] %s788_s18 }
 0x14e   : > { %s790_s30 = scalar_lea.vmem %s789_s18, 256  ;;  %p791_p9 = scmp.lt.s32.totalorder %s1146_s5, %s789_s18 }
 0x14f   : > { %p786_p0 = pnand %p785_p11, %p1035_p10  ;;  %p792_p1 = scmp.lt.s32.totalorder %s790_s30, %s784_s12 }
 0x151   : > { %p787_p5 = pneg %p786_p0  ;;  %p793_p2 = por %p792_p1, %p791_p9 }
 0x153   : > { %p794_p7 = pnand %p793_p2, %p787_p5 }
 0x1aa   : > { %v351_v12 = vpop.permute.xlu0 %350 }
 0x1ab   : > { %353 = vst.msk [vmem:[%s259_s9] sm:$0xff] %vm347_vm2, %v351_v12 }
 0x1ac   : > { %797 = shalt.err (!%p794_p7)
}
 0x1ad   : > { %s798_s13 = scalar_lea.hbm %s1144_s25, 128  ;;  %s802_s28 = scalar_lea.hbm %s1240_s3, 256 }
 0x1ae   : > { %p799_p3 = scmp.ne.s32.totalorder %s1144_s25, %s798_s13  ;;  %p803_p6 = scmp.lt.u32.totalorder %s1144_s25, %s1240_s3 }
 0x1af   : > { %p804_p8 = scmp.lt.u32.totalorder %s802_s28, %s798_s13  ;;  %p806_p11 = scmp.lt.u32.totalorder %s798_s13, %s1144_s25 }
 0x1b0   : > { %p800_p13 = pnand %p799_p3, %p1035_p10 }
 0x1b1   : > { %p805_p12 = por %p804_p8, %p803_p6 }
 0x1b2   : > { %p801_p4 = pneg %p800_p13 }
 0x1b3   : > { %p807_p0 = por %p806_p11, %p805_p12 }
 0x1b5   : > { %p808_p5 = pnand %p807_p0, %p801_p4 }
 0x1b7   : > { %811 = shalt.err (!%p808_p5)
}
 0x1b8   : > { %615 = dma.vmem_to_hbm [thread:$0]  (%p1035_p10), %s1146_s5, 128, %s1144_s25, %s1154_s21  }
 0x1b9   : > { %s1182_s30 = scalar_lea.hbm %s1241_s4, %s1104_s23  ;;  %s812_s13 = scalar_lea.vmem %s1185_s26, 128 }
 0x1ba   : > { %p813_p9 = scmp.ne.s32.totalorder %s1185_s26, %s812_s13  ;;  %s915_s5 = smov [#allocation10]  }
 0x1bb   : > { %v355_v13 = vpop.permute.xlu0 %354  ;;  %s816_s25 = sshll.u32 %s915_s5, 4  ;;  %s817_s25 = int_to_ptr.vmem [resolvable:$false] %s816_s25 }
 0x1bc   : > { %357 = vst.msk [vmem:[%s266_s14] sm:$0xff] %vm347_vm2, %v355_v13  ;;  %p814_p1 = pnand %p813_p9, %p1035_p10  ;;  %s818_s7 = scalar_lea.vmem %s817_s25, 256 }
 0x1bd   : > { %p819_p7 = scmp.lt.s32.totalorder %s1185_s26, %s817_s25  ;;  %p820_p3 = scmp.lt.s32.totalorder %s818_s7, %s812_s13 }
 0x1be   : > { %p815_p2 = pneg %p814_p1 }
 0x1bf   : > { %p821_p13 = por %p820_p3, %p819_p7 }
 0x1c1   : > { %p822_p4 = pnand %p821_p13, %p815_p2 }
 0x1c3   : > { %825 = shalt.err (!%p822_p4)
}
 0x1c4   : > { %s826_s10 = scalar_lea.hbm %s1182_s30, 128  ;;  %s830_s9 = scalar_lea.hbm %s1241_s4, 256 }
 0x1c5   : > { %p827_p6 = scmp.ne.s32.totalorder %s1182_s30, %s826_s10  ;;  %p831_p11 = scmp.lt.u32.totalorder %s1182_s30, %s1241_s4 }
 0x1c6   : > { %p832_p0 = scmp.lt.u32.totalorder %s830_s9, %s826_s10  ;;  %p834_p9 = scmp.lt.u32.totalorder %s826_s10, %s1182_s30 }
 0x1c7   : > { %p828_p8 = pnand %p827_p6, %p1035_p10 }
 0x1c8   : > { %p833_p5 = por %p832_p0, %p831_p11 }
 0x1c9   : > { %p829_p12 = pneg %p828_p8 }
 0x1ca   : > { %p835_p1 = por %p834_p9, %p833_p5 }
 0x1cc   : > { %p836_p2 = pnand %p835_p1, %p829_p12 }
 0x1ce   : > { %839 = shalt.err (!%p836_p2)
}
 0x1cf   : > { %616 = dma.vmem_to_hbm [thread:$0]  (%p1035_p10), %s1185_s26, 128, %s1182_s30, %s1154_s21  }
 0x1d0 PF: > { %s423_s27 = sand.u32 1, %s882_s15   ;;  %p1257_p7 = scmp.ne.s32.totalorder %s1246_s24, 0 }
 0x1d1   : > { %p1258_p3 = scmp.ge.s32.totalorder %s902_s20, 2  ;;  %s424_s12 = scalar_lea.sflag [#allocation4], %s423_s27 }
 0x1d3   : > { %p629_p13 = pnand %p1258_p3, %p1257_p7 }
 0x1d5   : > { %873 = dma.done.wait (!%p629_p13), %s424_s12, 128  }
 0x1d6   : > { %875 = vsyncadd (!%p629_p13), %s424_s12, 4294967168  ;;  %s432_s18 = sand.u32 1, %s565_s22  }
 0x1d7   : > { %s433_s13 = scalar_lea.sflag [#allocation9], %s432_s18 }
 0x1d8   : > { %877 = dma.done.wait (!%p629_p13), %s433_s13, 256  }
 0x1d9   : > { %879 = vsyncadd (!%p629_p13), %s433_s13, 4294967040  ;;  %s25_s20 = sadd.s32 1, %s902_s20   ;;  %s1259_s15 = smov %s886_s16 }
 0x1da   : > { %p22_p10 = scmp.ge.s32.totalorder %s25_s20, 4   ;;  %s1260_s16 = smov %s890_s17 }
 0x1db   : > { %s1261_s17 = smov %s1044_s8  ;;  %s1262_s18 = smov %s898_s19 }
 0x1dc   : > { %s1263_s19 = smov %s1265_s29  ;;  %24 = sbr.rel (!%p22_p10) target bundleno = 9 (0x9), region = 109 }
 0x1e3   :  { %447 = vsyncpa [#allocation3], 1 }
 0x1e4   :  { %449 = vsyncpa [#allocation3 + $0x1], 1 }
 0x1e5   :  { %450 = vsyncpa [#allocation6], 1 }
 0x1e6   :  { %451 = vsyncpa [#allocation4], 1 }
 0x1e7   :  { %453 = vsyncpa [#allocation4 + $0x1], 1 }
 0x1e8   :  { %454 = vsyncpa [#allocation9], 1 }
 0x1e9   :  { %456 = vsyncpa [#allocation9 + $0x1], 1 }

</bundles_post_ra>
